<compile_context>
chip_gen: v5e
topology: v5e:2x2
jax: 0.10.0
libtpu: 0.0.40
codegen_flags: <defaults>
</compile_context>

<pallas_src>
import functools

import jax
import jax.numpy as jnp
from jax import lax
from jax.experimental import pallas as pl
from jax.experimental.pallas import tpu as pltpu


def _boring_kernel(x_ref, w_ref, loss_ref, acc_ref, *, batch, tile_b, out_features):
    # x_ref: (tile_b, 32) f32 in VMEM
    # w_ref: (2, 32) f32 in VMEM (PyTorch Linear weight layout, resident across grid)
    # loss_ref: (1, 1) f32 in SMEM (scalar output)
    # acc_ref: (1, 1) f32 in SMEM (running sum of squared errors)
    i = pl.program_id(0)
    n = pl.num_programs(0)

    @pl.when(i == 0)
    def _init():
        acc_ref[0, 0] = jnp.float32(0.0)

    x = x_ref[...]
    w = w_ref[...]
    # Linear(32, 2, bias=False): y = x @ W.T, expressed as a contraction of
    # x dim 1 with w dim 1 -- feeds the MXU directly, no transpose anywhere.
    y = lax.dot_general(
        x,
        w,
        dimension_numbers=(((1,), (1,)), ((), ())),
        preferred_element_type=jnp.float32,
    )  # (tile_b, out_features)

    diff = y - 1.0
    sq = diff * diff

    if batch % tile_b != 0:
        # Mask rows of the (padded) last tile that lie beyond the true batch.
        row = lax.broadcasted_iota(jnp.int32, sq.shape, 0) + i * tile_b
        sq = jnp.where(row < batch, sq, 0.0)

    acc_ref[0, 0] += jnp.sum(sq)

    @pl.when(i == n - 1)
    def _finalize():
        # Mean over the true element count, applied exactly once (static
        # reciprocal multiply instead of a per-tile divide).
        loss_ref[0, 0] = acc_ref[0, 0] * jnp.float32(1.0 / (batch * out_features))


def boring_model_forward(x, w, *, tile_b=None):
    """x: (B, 32) f32; w: (2, 32) f32 (PyTorch Linear weight layout). Returns scalar loss."""
    batch, in_features = x.shape
    out_features = w.shape[0]

    if tile_b is None:
        # Multiple of 8 (sublane), capped so the double-buffered tile stays tiny
        # even under v7x's smaller 64 MiB VMEM.
        tile_b = min(1024, ((batch + 7) // 8) * 8)
    tile_b = max(8, (tile_b // 8) * 8)
    num_tiles = pl.cdiv(batch, tile_b)

    kernel = functools.partial(
        _boring_kernel, batch=batch, tile_b=tile_b, out_features=out_features
    )

    loss = pl.pallas_call(
        kernel,
        out_shape=jax.ShapeDtypeStruct((1, 1), jnp.float32),
        grid_spec=pltpu.PrefetchScalarGridSpec(
            num_scalar_prefetch=0,
            grid=(num_tiles,),
            in_specs=[
                pl.BlockSpec((tile_b, in_features), lambda i: (i, 0)),
                pl.BlockSpec((out_features, in_features), lambda i: (0, 0)),
            ],
            out_specs=pl.BlockSpec(memory_space=pltpu.SMEM),
            scratch_shapes=[pltpu.SMEM((1, 1), jnp.float32)],
        ),
        compiler_params=pltpu.CompilerParams(
            dimension_semantics=("arbitrary",),  # reduction axis: serial accumulation
        ),
    )(x, w)
    return loss[0, 0]


if __name__ == "__main__":
    key = jax.random.PRNGKey(0)
    kx, kw = jax.random.split(key)

    B, IN, OUT = 8, 32, 2
    x = jax.random.normal(kx, (B, IN), dtype=jnp.float32)
    # Deterministic init for the Linear weight, shape (out, in) like PyTorch.
    w = jax.random.uniform(
        kw,
        (OUT, IN),
        dtype=jnp.float32,
        minval=-(1.0 / IN) ** 0.5,
        maxval=(1.0 / IN) ** 0.5,
    )

    loss = boring_model_forward(x, w)
    jax.block_until_ready(loss)

    # Pure-JAX reference check
    ref = jnp.mean((x @ w.T - 1.0) ** 2)
    assert jnp.allclose(loss, ref, rtol=1e-5, atol=1e-5), (loss, ref)

    print("KERNEL_OK")
</pallas_src>

<mosaic_0001>
module attributes {stable_mosaic.version = 11 : i64} {
  func.func @_boring_kernel(%arg0: i32, %arg1: memref<8x32xf32, #tpu.memory_space<vmem>>, %arg2: memref<2x32xf32, #tpu.memory_space<vmem>>, %arg3: memref<1x1xf32, #tpu.memory_space<smem>>, %arg4: memref<1x1xf32, #tpu.memory_space<smem>>) attributes {dimension_semantics = [#tpu.dimension_semantics<arbitrary>], iteration_bounds = array<i64: 1>, scalar_prefetch = 0 : i64, scratch_operands = 1 : i64, tpu.core_type = #tpu.core_type<tc>, window_params = [{transform_indices = @transform_0, window_bounds = array<i64: 8, 32>}, {pipeline_mode = #tpu.pipeline_mode<synchronous>, transform_indices = @transform_1, window_bounds = array<i64: 2, 32>}, {transform_indices = @transform_2, window_bounds = array<i64: 1, 1>}]} {
    %c0_i32 = arith.constant 0 : i32
    %0 = arith.cmpi eq, %arg0, %c0_i32 : i32
    %1 = arith.extui %0 : i1 to i32
    %c0_i32_0 = arith.constant 0 : i32
    %2 = arith.cmpi ne, %1, %c0_i32_0 : i32
    scf.if %2 {
      %cst_12 = arith.constant 0.000000e+00 : f32
      %c0_13 = arith.constant 0 : index
      %c0_14 = arith.constant 0 : index
      %19 = memref.load %arg4[%c0_13, %c0_14] : memref<1x1xf32, #tpu.memory_space<smem>>
      memref.store %cst_12, %arg4[%c0_13, %c0_14] : memref<1x1xf32, #tpu.memory_space<smem>>
    } else {
    }
    %c0 = arith.constant 0 : index
    %c0_1 = arith.constant 0 : index
    %3 = vector.load %arg1[%c0, %c0_1] : memref<8x32xf32, #tpu.memory_space<vmem>>, vector<8x32xf32>
    %c0_2 = arith.constant 0 : index
    %c0_3 = arith.constant 0 : index
    %4 = vector.load %arg2[%c0_2, %c0_3] : memref<2x32xf32, #tpu.memory_space<vmem>>, vector<2x32xf32>
    %cst = arith.constant dense<0.000000e+00> : vector<8x2xf32>
    %5 = tpu.matmul %3, %4, %cst {dimension_numbers = #tpu.dot_dimension_numbers<[1], [1], [0], [0], [0, 0, 1, 0], [], []>} : vector<8x32xf32>, vector<2x32xf32>, vector<8x2xf32> -> vector<8x2xf32>
    %cst_4 = arith.constant 1.000000e+00 : f32
    %6 = vector.broadcast %cst_4 : f32 to vector<8x2xf32>
    %7 = arith.subf %5, %6 : vector<8x2xf32>
    %8 = arith.mulf %7, %7 : vector<8x2xf32>
    %c0_5 = arith.constant 0 : index
    %c0_6 = arith.constant 0 : index
    %9 = memref.load %arg4[%c0_5, %c0_6] : memref<1x1xf32, #tpu.memory_space<smem>>
    %10 = vector.shape_cast %8 : vector<8x2xf32> to vector<1x8x2xf32>
    %cst_7 = arith.constant dense<0.000000e+00> : vector<1xf32>
    %11 = vector.multi_reduction <add>, %10, %cst_7 [1, 2] : vector<1x8x2xf32> to vector<1xf32>
    %12 = vector.shape_cast %11 : vector<1xf32> to vector<1x1x1xf32>
    %13 = vector.extract %12[0, 0, 0] : f32 from vector<1x1x1xf32>
    %14 = arith.addf %9, %13 : f32
    %c0_8 = arith.constant 0 : index
    %c0_9 = arith.constant 0 : index
    %15 = memref.load %arg4[%c0_8, %c0_9] : memref<1x1xf32, #tpu.memory_space<smem>>
    memref.store %14, %arg4[%c0_8, %c0_9] : memref<1x1xf32, #tpu.memory_space<smem>>
    %c0_i32_10 = arith.constant 0 : i32
    %16 = arith.cmpi eq, %arg0, %c0_i32_10 : i32
    %17 = arith.extui %16 : i1 to i32
    %c0_i32_11 = arith.constant 0 : i32
    %18 = arith.cmpi ne, %17, %c0_i32_11 : i32
    scf.if %18 {
      %c0_12 = arith.constant 0 : index
      %c0_13 = arith.constant 0 : index
      %19 = memref.load %arg4[%c0_12, %c0_13] : memref<1x1xf32, #tpu.memory_space<smem>>
      %cst_14 = arith.constant 6.250000e-02 : f32
      %20 = arith.mulf %19, %cst_14 : f32
      %c0_15 = arith.constant 0 : index
      %c0_16 = arith.constant 0 : index
      %21 = memref.load %arg3[%c0_15, %c0_16] : memref<1x1xf32, #tpu.memory_space<smem>>
      memref.store %20, %arg3[%c0_15, %c0_16] : memref<1x1xf32, #tpu.memory_space<smem>>
    } else {
    }
    return
  }
  func.func @transform_0(%arg0: i32) -> (i32, i32) {
    %c0_i32 = arith.constant 0 : i32
    %c0_i32_0 = arith.constant 0 : i32
    return %arg0, %c0_i32 : i32, i32
  }
  func.func @transform_1(%arg0: i32) -> (i32, i32) {
    %c0_i32 = arith.constant 0 : i32
    %c0_i32_0 = arith.constant 0 : i32
    %c0_i32_1 = arith.constant 0 : i32
    return %c0_i32, %c0_i32_0 : i32, i32
  }
  func.func @transform_2(%arg0: i32) -> (i32, i32) {
    %c0_i32 = arith.constant 0 : i32
    %c0_i32_0 = arith.constant 0 : i32
    %c0_i32_1 = arith.constant 0 : i32
    return %c0_i32, %c0_i32_0 : i32, i32
  }
}

</mosaic_0001>

<bundles_post_ra>
// kernel: tpu_custom_call.1
= control target key start
LH: loop header
LB: loop body
LE: loop exit
PB: predicated region body
PF: predicated region fallthrough
CT: control target
= control target key end

     0   :  { %7 = vsyncpa [#allocation4], 0  ;;  %s217_s0 = inlined_call_operand.hbm [shape: f32[8,32], index: 0, kind: input, shape index: {}]   ;;  %s218_s1 = inlined_call_operand.hbm [shape: f32[2,32], index: 1, kind: input, shape index: {}]   ;;  %s219_s2 = inlined_call_operand.hbm [shape: f32[1,1], index: 2, kind: output, shape index: {}]  }
   0x1   :  { %8 = vsyncpa [#allocation7], 0 }
   0x2   :  { %9 = vsyncpa [#allocation5], 0  ;;  %s15_s11 = sshll.u32 %s217_s0, 4  ;;  %s190_s12 = smov [#allocation3]   ;;  %s16_s11 = int_to_ptr.hbm [resolvable:$true] %s15_s11 }
   0x3   :  { %s17_s13 = sshll.u32 %s190_s12, 4  ;;  %s26_s16 = sshll.u32 %s218_s1, 4  ;;  %s18_s13 = int_to_ptr.vmem [resolvable:$true] %s17_s13  ;;  %s27_s16 = int_to_ptr.hbm [resolvable:$true] %s26_s16 }
   0x4   :  { %20 = dma.hbm_to_vmem [thread:$0]  %s16_s11, 128, %s18_s13, [#allocation4]  }
   0x5   :  { %s191_s17 = smov [#allocation6]  }
   0x6   :  { %s28_s18 = sshll.u32 %s191_s17, 4  ;;  %s29_s18 = int_to_ptr.vmem [resolvable:$true] %s28_s18 }
   0x7   :  { %31 = dma.hbm_to_vmem [thread:$0]  %s27_s16, 32, %s29_s18, [#allocation7]  }
   0x8   :  { %184 = dma.done.wait [#allocation4], 128  }
   0x9   :  { %185 = vsyncadd [#allocation4], 4294967168 }
   0xa   :  { %186 = dma.done.wait [#allocation7], 32  }
   0xb   :  { %187 = vsyncadd [#allocation7], 4294967264  ;;  %vm48_vm0 = vcmask 261120   ;;  %v47_v0 = vld [vmem:[#allocation6] sm:$0x3]  ;;  %v46_v1 = vld [vmem:[#allocation3] sm:$0xff] }
   0xc   :  { %116 = vmatpush.xpose.msk.msra.mxu0 %vm48_vm0, %v47_v0  ;;  %vm78_vm1 = vcmask 15360   ;;  %s104_s19 = sshll.u32 %s219_s2, 4  ;;  %s192_s22 = smov [#allocation8]   ;;  %s105_s19 = int_to_ptr.hbm [resolvable:$true] %s104_s19 }
   0xf   :  { %117 = vmatmul.msk.f32.vlgmr.msra.gmra.mxu0 %vm48_vm0, %v46_v1 }
  0x8c   :  { %v72_v2 = vpop.f32.mrf.mxu0 }
  0x8d   :  { %v118_v3 = vadd.f32 -1.0, %v72_v2 }
  0x8f   :  { %v76_v4 = vmul.f32 %v118_v3, %v118_v3 }
  0x91   :  { %v79_v5 = vsel %vm78_vm1, %v76_v4, 0.0 }
  0x92   :  { %80 = vadd.xlane.f32.xlu0 %v79_v5 }
 0x105   :  { %v81_v6 = vpop.xlane.xlu0 %80 }
 0x106   :  { %v82_v7 = vrot.slane %v81_v6, 4 }
 0x108   :  { %v83_v8 = vadd.f32 %v82_v7, %v81_v6 }
 0x10a   :  { %v84_v9 = vrot.slane %v83_v8, 2 }
 0x10c   :  { %v85_v10 = vadd.f32 %v84_v9, %v83_v8 }
 0x10e   :  { %v86_v11 = vrot.slane %v85_v10, 1 }
 0x110   :  { %v87_v12 = vadd.f32 %v86_v11, %v85_v10 }
 0x112   :  { %119 = vpush %v87_v12 }
 0x143   :  { %s120_s20 = spop %119 }
 0x144   :  { %s96_s21 = smul.f32 0.0625, %s120_s20 }
 0x146   :  { %98 = sst [smem:[#allocation8]] %s96_s21 }
 0x147   :  { %107 = dma.smem_to_hbm %s192_s22, 16, %s105_s19, [#allocation5]  }
 0x148   :  { %188 = dma.done.wait [#allocation5], 16  }
 0x149   :  { %189 = vsyncadd [#allocation5], 4294967280 }
 0x14a   :  { %112 = sfence }
 0x14b   :  { %113 = vsyncpa [#allocation4], 1 }
 0x14c   :  { %114 = vsyncpa [#allocation7], 1 }
 0x14d   :  { %115 = vsyncpa [#allocation5], 1 }

</bundles_post_ra>
